<compile_context>
chip_gen: v5e
topology: v5e:2x2
jax: 0.10.0
libtpu: 0.0.40
codegen_flags: <defaults>
</compile_context>

<pallas_src>
import functools

import jax
import jax.numpy as jnp
from jax.experimental import pallas as pl
from jax.experimental.pallas import tpu as pltpu


def _cdiv(a, b):
    return (a + b - 1) // b


def _round_up(x, m):
    return _cdiv(x, m) * m


# VMEM budgets (bytes), derived against the smallest physical VMEM (v7x 64 MiB)
# assuming Mosaic double-buffers every input block (worst case).
_RESIDENT_WEIGHT_BUDGET = 40 * 1024 ** 2   # double-buffered w1 + w2
_TILED_WEIGHT_BUDGET = 24 * 1024 ** 2      # double-buffered w1/w2 hidden tiles


# ---------------------------------------------------------------------------
# Kernels
# ---------------------------------------------------------------------------
def _layernorm_residual(x, y, params, inv_d, mask_needed):
    """x + LayerNorm(y + b2) * gamma + beta, padded-lane aware (all f32)."""
    b2 = params[0:1, :]
    gamma = params[1:2, :]       # zero in pad lanes
    beta = params[2:3, :]        # zero in pad lanes
    y = y + b2
    # Pad lanes of y are exactly 0 (w2 / b2 pad region is zero), so the mean
    # needs no mask.  (y - mean) is nonzero in pad lanes, so the variance sum
    # uses the precomputed {0,1} lane mask stored as row 3 of the params block.
    mean = jnp.sum(y, axis=-1, keepdims=True) * inv_d
    centered = y - mean
    c = centered * params[3:4, :] if mask_needed else centered
    var = jnp.sum(c * c, axis=-1, keepdims=True) * inv_d
    normed = centered * jax.lax.rsqrt(var + 1e-5) * gamma + beta
    return x.astype(jnp.float32) + normed


def _expert_kernel_resident(x_ref, w1_ref, w2_ref, b1_ref, params_ref, o_ref,
                            *, inv_d, mask_needed):
    """Weight-resident path: whole expert per grid step (batch-tiled)."""
    x = x_ref[...]
    h = jnp.dot(x, w1_ref[...], preferred_element_type=jnp.float32)
    h = jnp.maximum(h + b1_ref[...], 0.0).astype(w2_ref.dtype)
    y = jnp.dot(h, w2_ref[...], preferred_element_type=jnp.float32)
    out = _layernorm_residual(x, y, params_ref[...], inv_d, mask_needed)
    o_ref[...] = out.astype(o_ref.dtype)


def _expert_kernel_htiled(x_ref, w1_ref, w2_ref, b1_ref, params_ref, o_ref,
                          acc_ref, *, inv_d, mask_needed):
    """H-tiled path: accumulate y over hidden chunks, finalize on last step."""
    k = pl.program_id(1)

    @pl.when(k == 0)
    def _():
        acc_ref[...] = jnp.zeros_like(acc_ref)

    x = x_ref[...]
    h = jnp.dot(x, w1_ref[...], preferred_element_type=jnp.float32)
    h = jnp.maximum(h + b1_ref[...], 0.0).astype(w2_ref.dtype)
    acc_ref[...] += jnp.dot(h, w2_ref[...], preferred_element_type=jnp.float32)

    @pl.when(k == pl.num_programs(1) - 1)
    def _():
        out = _layernorm_residual(x, acc_ref[...], params_ref[...],
                                  inv_d, mask_needed)
        o_ref[...] = out.astype(o_ref.dtype)


# ---------------------------------------------------------------------------
# Host-side preparation (do once, cache, reuse across forward calls)
# ---------------------------------------------------------------------------
def prepare_expert_params(w1, b1, w2, b2, gamma, beta):
    """Pad / pack expert parameters once.

    w1: (D, H), w2: (H, D)  (transposed w.r.t. PyTorch Linear storage).
    Pad regions are zeroed so padded lanes stay mathematically inert.
    """
    D, H = w1.shape
    assert w2.shape == (H, D)
    Dp = _round_up(D, 128)
    Hp = _round_up(H, 128)

    if Dp == D and Hp == H:
        w1p, w2p = w1, w2                          # no-copy fast path
    else:
        w1p = jnp.zeros((Dp, Hp), w1.dtype).at[:D, :H].set(w1)
        w2p = jnp.zeros((Hp, Dp), w2.dtype).at[:H, :D].set(w2)

    b1p = jnp.zeros((1, Hp), jnp.float32).at[0, :H].set(b1.astype(jnp.float32))

    # Packed (4, Dp) f32 block: [b2, gamma, beta, LayerNorm lane mask].
    params = jnp.zeros((4, Dp), jnp.float32)
    params = params.at[0, :D].set(b2.astype(jnp.float32))
    params = params.at[1, :D].set(gamma.astype(jnp.float32))
    params = params.at[2, :D].set(beta.astype(jnp.float32))
    params = params.at[3, :D].set(1.0)

    return dict(w1p=w1p, w2p=w2p, b1p=b1p, params=params,
                D=D, H=H, Dp=Dp, Hp=Hp)


def _pick_hidden_tile(Hp, Dp, wbytes):
    # v6e/v7x MXUs are 2x256^2 -> prefer 256-multiples; 128 is the v5e-friendly
    # fallback (and always divides Hp, since Hp is a multiple of 128).
    align = 256 if Hp % 256 == 0 else 128
    th = (_TILED_WEIGHT_BUDGET // max(1, 4 * Dp * wbytes)) // align * align
    th = int(min(max(th, align), Hp))
    while Hp % th != 0:
        th -= align
        if th < 128:
            th = 128
            break
    return th


# ---------------------------------------------------------------------------
# Forward
# ---------------------------------------------------------------------------
def expert_apply(x, prep, *, bm=None, hidden_tile=None):
    """x: (B, D); prep: output of prepare_expert_params (cached)."""
    B, D = x.shape
    assert D == prep["D"]
    Dp, Hp = prep["Dp"], prep["Hp"]
    w1p, w2p, b1p, params = prep["w1p"], prep["w2p"], prep["b1p"], prep["params"]
    wbytes = jnp.dtype(w1p.dtype).itemsize
    xbytes = jnp.dtype(x.dtype).itemsize

    # Batch tile: >= 2 grid steps whenever B > 8 so both v7x TensorCores get
    # work; cap at 256 for big hidden dims to limit live vregs / VMEM.
    if bm is None:
        cap = 512 if Hp <= 512 else 256
        if B > 8:
            bm = min(cap, _round_up(_cdiv(B, 2), 8))
        else:
            bm = _round_up(max(B, 1), 8)
    bm = max(8, _round_up(bm, 8))
    Bp = _round_up(B, bm)

    # Path selection: keep weights resident only if their (double-buffered)
    # footprint fits the v7x-safe budget.
    resident_weight_bytes = 2 * 2 * Dp * Hp * wbytes
    use_htile = (hidden_tile is not None
                 or resident_weight_bytes > _RESIDENT_WEIGHT_BUDGET)

    # No-copy fast path for x / out when already lane/row aligned.
    pad_x = (Bp != B) or (Dp != D)
    xp = x if not pad_x else jnp.zeros((Bp, Dp), x.dtype).at[:B, :D].set(x)
    # NOTE: padded batch rows (Bp != B) still run through the LayerNorm (eps
    # keeps them finite); they are wasted work, discarded by the final slice.

    inv_d = 1.0 / float(D)
    mask_needed = (Dp != D)

    if not use_htile:
        grid = (Bp // bm,)
        kernel = functools.partial(_expert_kernel_resident,
                                   inv_d=inv_d, mask_needed=mask_needed)
        in_specs = [
            pl.BlockSpec((bm, Dp), lambda i: (i, 0)),     # x tile (lane-dense)
            # Constant index_map -> weights stay resident across grid steps.
            # (If the MLIR shows Mosaic double-buffering these constant blocks,
            #  pipeline_mode=pl.Buffered(1) halves that VMEM term.)
            pl.BlockSpec((Dp, Hp), lambda i: (0, 0)),     # w1
            pl.BlockSpec((Hp, Dp), lambda i: (0, 0)),     # w2
            pl.BlockSpec((1, Hp), lambda i: (0, 0)),      # b1
            pl.BlockSpec((4, Dp), lambda i: (0, 0)),      # b2/gamma/beta/mask
        ]
        out_specs = pl.BlockSpec((bm, Dp), lambda i: (i, 0))
        scratch = []
        dims = ("parallel",)
        est = (resident_weight_bytes
               + 4 * bm * Dp * xbytes          # x / out double buffers
               + bm * Hp * (4 + wbytes)        # h (f32) + native-dtype copy
               + 4 * bm * Dp * 4)              # LayerNorm temporaries
    else:
        th = hidden_tile if hidden_tile is not None else _pick_hidden_tile(Hp, Dp, wbytes)
        assert th % 128 == 0 and Hp % th == 0, "hidden tile must divide padded H"
        grid = (Bp // bm, Hp // th)
        kernel = functools.partial(_expert_kernel_htiled,
                                   inv_d=inv_d, mask_needed=mask_needed)
        in_specs = [
            pl.BlockSpec((bm, Dp), lambda i, k: (i, 0)),  # x tile
            pl.BlockSpec((Dp, th), lambda i, k: (0, k)),  # w1 hidden chunk
            pl.BlockSpec((th, Dp), lambda i, k: (k, 0)),  # w2 hidden chunk
            pl.BlockSpec((1, th), lambda i, k: (0, k)),   # b1 hidden chunk
            pl.BlockSpec((4, Dp), lambda i, k: (0, 0)),   # b2/gamma/beta/mask
        ]
        out_specs = pl.BlockSpec((bm, Dp), lambda i, k: (i, 0))
        scratch = [pltpu.VMEM((bm, Dp), jnp.float32)]     # y accumulator
        dims = ("parallel", "arbitrary")
        est = (2 * 2 * Dp * th * wbytes        # double-buffered weight tiles
               + 4 * bm * Dp * xbytes          # x / out double buffers
               + bm * Dp * 4                   # accumulator scratch
               + bm * th * (4 + wbytes)        # h (f32) + native-dtype copy
               + 4 * bm * Dp * 4)              # LayerNorm temporaries

    vmem_limit = int(min(max(2 * est, 32 * 1024 ** 2), 128 * 1024 ** 2))

    out_p = pl.pallas_call(
        kernel,
        out_shape=jax.ShapeDtypeStruct((Bp, Dp), x.dtype),
        grid_spec=pltpu.PrefetchScalarGridSpec(
            num_scalar_prefetch=0,
            grid=grid,
            in_specs=in_specs,
            out_specs=out_specs,
            scratch_shapes=scratch,
        ),
        compiler_params=pltpu.CompilerParams(
            dimension_semantics=dims,
            vmem_limit_bytes=vmem_limit,
        ),
    )(xp, w1p, w2p, b1p, params)

    return out_p if not pad_x else out_p[:B, :D]


def expert_forward(x, w1, b1, w2, b2, gamma, beta, **kwargs):
    """One-shot convenience (re-pads params every call).  For repeated calls,
    use prepare_expert_params() once and expert_apply()."""
    return expert_apply(x, prepare_expert_params(w1, b1, w2, b2, gamma, beta),
                        **kwargs)


def reference_forward(x, w1, b1, w2, b2, gamma, beta):
    h = jnp.maximum(x @ w1 + b1, 0.0)
    y = h @ w2 + b2
    mean = jnp.mean(y, axis=-1, keepdims=True)
    var = jnp.mean((y - mean) ** 2, axis=-1, keepdims=True)
    return x + (y - mean) * jax.lax.rsqrt(var + 1e-5) * gamma + beta


if __name__ == "__main__":
    key = jax.random.PRNGKey(0)

    def make_case(case_key, batch, d, h):
        kx, k1, k2, k3, k4 = jax.random.split(case_key, 5)
        lim1 = 1.0 / (d ** 0.5)
        lim2 = 1.0 / (h ** 0.5)
        x = jax.random.normal(kx, (batch, d), dtype=jnp.float32)
        w1 = jax.random.uniform(k1, (d, h), jnp.float32, -lim1, lim1)
        b1 = jax.random.uniform(k2, (h,), jnp.float32, -lim1, lim1)
        w2 = jax.random.uniform(k3, (h, d), jnp.float32, -lim2, lim2)
        b2 = jax.random.uniform(k4, (d,), jnp.float32, -lim2, lim2)
        gamma = jnp.ones((d,), jnp.float32)    # LayerNorm weight init
        beta = jnp.zeros((d,), jnp.float32)    # LayerNorm bias init
        return x, (w1, b1, w2, b2, gamma, beta)

    k0, k1 = jax.random.split(key)

    # Case 1: ExpertModule(shared_dim=32, hidden_dim_multiplier=2), batch 8
    #         -> weight-resident path, lane-padded (D=32 -> Dp=128).
    x, p = make_case(k0, 8, 32, 64)
    prep = prepare_expert_params(*p)                 # pad/pack once, reuse
    out = jax.block_until_ready(expert_apply(x, prep))
    ref = reference_forward(x, *p)
    assert out.shape == x.shape
    assert jnp.allclose(out, ref, atol=5e-5, rtol=5e-5), "resident path mismatch"

    # Case 2: lane-aligned shapes, forced H-tiled accumulate path
    #         (exercises the 2-D grid, VMEM accumulator and no-copy fast path).
    x2, p2 = make_case(k1, 16, 128, 256)
    prep2 = prepare_expert_params(*p2)
    out2 = jax.block_until_ready(expert_apply(x2, prep2, hidden_tile=128))
    ref2 = reference_forward(x2, *p2)
    assert out2.shape == x2.shape
    assert jnp.allclose(out2, ref2, atol=1e-4, rtol=1e-4), "h-tiled path mismatch"

    print("KERNEL_OK")
</pallas_src>

<mosaic_0001>
module attributes {stable_mosaic.version = 11 : i64} {
  func.func @_expert_kernel_resident(%arg0: i32, %arg1: memref<8x128xf32, #tpu.memory_space<vmem>>, %arg2: memref<128x128xf32, #tpu.memory_space<vmem>>, %arg3: memref<128x128xf32, #tpu.memory_space<vmem>>, %arg4: memref<1x128xf32, #tpu.memory_space<vmem>>, %arg5: memref<4x128xf32, #tpu.memory_space<vmem>>, %arg6: memref<8x128xf32, #tpu.memory_space<vmem>>) attributes {dimension_semantics = [#tpu.dimension_semantics<parallel>], iteration_bounds = array<i64: 1>, scalar_prefetch = 0 : i64, scratch_operands = 0 : i64, tpu.core_type = #tpu.core_type<tc>, window_params = [{transform_indices = @transform_0, window_bounds = array<i64: 8, 128>}, {pipeline_mode = #tpu.pipeline_mode<synchronous>, transform_indices = @transform_1, window_bounds = array<i64: 128, 128>}, {pipeline_mode = #tpu.pipeline_mode<synchronous>, transform_indices = @transform_2, window_bounds = array<i64: 128, 128>}, {pipeline_mode = #tpu.pipeline_mode<synchronous>, transform_indices = @transform_3, window_bounds = array<i64: 1, 128>}, {pipeline_mode = #tpu.pipeline_mode<synchronous>, transform_indices = @transform_4, window_bounds = array<i64: 4, 128>}, {transform_indices = @transform_5, window_bounds = array<i64: 8, 128>}]} {
    %c0 = arith.constant 0 : index
    %c0_0 = arith.constant 0 : index
    %0 = vector.load %arg1[%c0, %c0_0] : memref<8x128xf32, #tpu.memory_space<vmem>>, vector<8x128xf32>
    %c0_1 = arith.constant 0 : index
    %c0_2 = arith.constant 0 : index
    %1 = vector.load %arg2[%c0_1, %c0_2] : memref<128x128xf32, #tpu.memory_space<vmem>>, vector<128x128xf32>
    %cst = arith.constant dense<0.000000e+00> : vector<8x128xf32>
    %2 = tpu.matmul %0, %1, %cst {dimension_numbers = #tpu.dot_dimension_numbers<[1], [0], [0], [1], [0, 0, 1, 1], [], []>} : vector<8x128xf32>, vector<128x128xf32>, vector<8x128xf32> -> vector<8x128xf32>
    %c0_3 = arith.constant 0 : index
    %c0_4 = arith.constant 0 : index
    %3 = vector.load %arg4[%c0_3, %c0_4] : memref<1x128xf32, #tpu.memory_space<vmem>>, vector<1x128xf32>
    %4 = vector.broadcast %3 : vector<1x128xf32> to vector<8x128xf32>
    %5 = arith.addf %2, %4 : vector<8x128xf32>
    %cst_5 = arith.constant 0.000000e+00 : f32
    %6 = vector.broadcast %cst_5 : f32 to vector<8x128xf32>
    %7 = arith.maximumf %5, %6 : vector<8x128xf32>
    %c0_6 = arith.constant 0 : index
    %c0_7 = arith.constant 0 : index
    %8 = vector.load %arg3[%c0_6, %c0_7] : memref<128x128xf32, #tpu.memory_space<vmem>>, vector<128x128xf32>
    %cst_8 = arith.constant dense<0.000000e+00> : vector<8x128xf32>
    %9 = tpu.matmul %7, %8, %cst_8 {dimension_numbers = #tpu.dot_dimension_numbers<[1], [0], [0], [1], [0, 0, 1, 1], [], []>} : vector<8x128xf32>, vector<128x128xf32>, vector<8x128xf32> -> vector<8x128xf32>
    %c0_9 = arith.constant 0 : index
    %c0_10 = arith.constant 0 : index
    %10 = vector.load %arg5[%c0_9, %c0_10] : memref<4x128xf32, #tpu.memory_space<vmem>>, vector<4x128xf32>
    %11 = vector.extract_strided_slice %10 {offsets = [0, 0], sizes = [1, 128], strides = [1, 1]} : vector<4x128xf32> to vector<1x128xf32>
    %12 = vector.extract_strided_slice %10 {offsets = [1, 0], sizes = [1, 128], strides = [1, 1]} : vector<4x128xf32> to vector<1x128xf32>
    %13 = vector.extract_strided_slice %10 {offsets = [2, 0], sizes = [1, 128], strides = [1, 1]} : vector<4x128xf32> to vector<1x128xf32>
    %14 = vector.broadcast %11 : vector<1x128xf32> to vector<8x128xf32>
    %15 = arith.addf %9, %14 : vector<8x128xf32>
    %cst_11 = arith.constant dense<0.000000e+00> : vector<8xf32>
    %16 = vector.multi_reduction <add>, %15, %cst_11 [1] : vector<8x128xf32> to vector<8xf32>
    %17 = vector.shape_cast %16 : vector<8xf32> to vector<8x1xf32>
    %cst_12 = arith.constant 3.125000e-02 : f32
    %18 = vector.broadcast %cst_12 : f32 to vector<8x1xf32>
    %19 = arith.mulf %17, %18 : vector<8x1xf32>
    %20 = vector.broadcast %19 : vector<8x1xf32> to vector<8x128xf32>
    %21 = arith.subf %15, %20 : vector<8x128xf32>
    %22 = vector.extract_strided_slice %10 {offsets = [3, 0], sizes = [1, 128], strides = [1, 1]} : vector<4x128xf32> to vector<1x128xf32>
    %23 = vector.broadcast %22 : vector<1x128xf32> to vector<8x128xf32>
    %24 = arith.mulf %21, %23 : vector<8x128xf32>
    %25 = arith.mulf %24, %24 : vector<8x128xf32>
    %cst_13 = arith.constant dense<0.000000e+00> : vector<8xf32>
    %26 = vector.multi_reduction <add>, %25, %cst_13 [1] : vector<8x128xf32> to vector<8xf32>
    %27 = vector.shape_cast %26 : vector<8xf32> to vector<8x1xf32>
    %cst_14 = arith.constant 3.125000e-02 : f32
    %28 = vector.broadcast %cst_14 : f32 to vector<8x1xf32>
    %29 = arith.mulf %27, %28 : vector<8x1xf32>
    %cst_15 = arith.constant 9.99999974E-6 : f32
    %30 = vector.broadcast %cst_15 : f32 to vector<8x1xf32>
    %31 = arith.addf %29, %30 : vector<8x1xf32>
    %32 = math.rsqrt %31 : vector<8x1xf32>
    %33 = vector.broadcast %32 : vector<8x1xf32> to vector<8x128xf32>
    %34 = arith.mulf %21, %33 : vector<8x128xf32>
    %35 = vector.broadcast %12 : vector<1x128xf32> to vector<8x128xf32>
    %36 = arith.mulf %34, %35 : vector<8x128xf32>
    %37 = vector.broadcast %13 : vector<1x128xf32> to vector<8x128xf32>
    %38 = arith.addf %36, %37 : vector<8x128xf32>
    %39 = arith.addf %0, %38 : vector<8x128xf32>
    %c0_16 = arith.constant 0 : index
    %c0_17 = arith.constant 0 : index
    %40 = vector.load %arg6[%c0_16, %c0_17] : memref<8x128xf32, #tpu.memory_space<vmem>>, vector<8x128xf32>
    tpu.vector_store %arg6[%c0_16, %c0_17], %39 {strides = array<i32>} : memref<8x128xf32, #tpu.memory_space<vmem>>, vector<8x128xf32>,
    return
  }
  func.func @transform_0(%arg0: i32) -> (i32, i32) {
    %c0_i32 = arith.constant 0 : i32
    %c0_i32_0 = arith.constant 0 : i32
    return %arg0, %c0_i32 : i32, i32
  }
  func.func @transform_1(%arg0: i32) -> (i32, i32) {
    %c0_i32 = arith.constant 0 : i32
    %c0_i32_0 = arith.constant 0 : i32
    %c0_i32_1 = arith.constant 0 : i32
    return %c0_i32, %c0_i32_0 : i32, i32
  }
  func.func @transform_2(%arg0: i32) -> (i32, i32) {
    %c0_i32 = arith.constant 0 : i32
    %c0_i32_0 = arith.constant 0 : i32
    %c0_i32_1 = arith.constant 0 : i32
    return %c0_i32, %c0_i32_0 : i32, i32
  }
  func.func @transform_3(%arg0: i32) -> (i32, i32) {
    %c0_i32 = arith.constant 0 : i32
    %c0_i32_0 = arith.constant 0 : i32
    %c0_i32_1 = arith.constant 0 : i32
    return %c0_i32, %c0_i32_0 : i32, i32
  }
  func.func @transform_4(%arg0: i32) -> (i32, i32) {
    %c0_i32 = arith.constant 0 : i32
    %c0_i32_0 = arith.constant 0 : i32
    %c0_i32_1 = arith.constant 0 : i32
    return %c0_i32, %c0_i32_0 : i32, i32
  }
  func.func @transform_5(%arg0: i32) -> (i32, i32) {
    %c0_i32 = arith.constant 0 : i32
    %c0_i32_0 = arith.constant 0 : i32
    return %arg0, %c0_i32 : i32, i32
  }
}

</mosaic_0001>

<bundles_post_ra>
// kernel: tpu_custom_call.1
= control target key start
LH: loop header
LB: loop body
LE: loop exit
PB: predicated region body
PF: predicated region fallthrough
CT: control target
= control target key end

     0   :  { %10 = vsyncpa [#allocation3], 0  ;;  %s400_s0 = inlined_call_operand.hbm [shape: f32[8,128], index: 0, kind: input, shape index: {}]   ;;  %s401_s1 = inlined_call_operand.hbm [shape: f32[128,128], index: 1, kind: input, shape index: {}]   ;;  %s402_s2 = inlined_call_operand.hbm [shape: f32[128,128], index: 2, kind: input, shape index: {}]   ;;  %s403_s3 = inlined_call_operand.vmem [shape: f32[1,128], index: 3, kind: input, shape index: {}]   ;;  %s404_s4 = inlined_call_operand.hbm [shape: f32[4,128], index: 4, kind: input, shape index: {}]   ;;  %s405_s5 = inlined_call_operand.hbm [shape: f32[8,128], index: 5, kind: output, shape index: {}]  }
   0x1   :  { %11 = vsyncpa [#allocation6], 0 }
   0x2   :  { %12 = vsyncpa [#allocation9], 0  ;;  %s29_s20 = sshll.u32 %s401_s1, 4  ;;  %s30_s20 = int_to_ptr.hbm [resolvable:$true] %s29_s20 }
   0x3   :  { %13 = vsyncpa [#allocation4], 0  ;;  %s345_s21 = smov [#allocation5]   ;;  %s19_s25 = sshll.u32 %s400_s0, 4  ;;  %s20_s25 = int_to_ptr.hbm [resolvable:$true] %s19_s25 }
   0x4   :  { %s31_s22 = sshll.u32 %s345_s21, 4  ;;  %s346_s26 = smov 128   ;;  %s32_s22 = int_to_ptr.vmem [resolvable:$true] %s31_s22 }
   0x5   :  { %s347_s27 = smov 8   ;;  %s348_s28 = smov [#allocation2]  }
   0x6   :  { %37 = dma.hbm_to_vmem [thread:$0]  %s30_s20, 2048, %s32_s22, [#allocation6], %s346_s26, %s346_s26, %s347_s27  }
   0x7   :  { %s21_s29 = sshll.u32 %s348_s28, 4  ;;  %s42_s7 = sshll.u32 %s402_s2, 4  ;;  %s22_s29 = int_to_ptr.vmem [resolvable:$true] %s21_s29  ;;  %s43_s7 = int_to_ptr.hbm [resolvable:$true] %s42_s7 }
   0x8   :  { %24 = dma.hbm_to_vmem [thread:$0]  %s20_s25, 128, %s22_s29, [#allocation3]  }
   0x9   :  { %s58_s9 = sshll.u32 %s404_s4, 4  ;;  %s349_s10 = smov [#allocation7]   ;;  %s59_s9 = int_to_ptr.hbm [resolvable:$true] %s58_s9 }
   0xa   :  { %s44_s11 = sshll.u32 %s349_s10, 4  ;;  %s350_s0 = smov [#allocation8]   ;;  %s45_s11 = int_to_ptr.vmem [resolvable:$true] %s44_s11 }
   0xb   :  { %50 = dma.hbm_to_vmem [thread:$0]  %s43_s7, 2048, %s45_s11, [#allocation6], %s346_s26, %s346_s26, %s347_s27  }
   0xc   :  { %s60_s12 = sshll.u32 %s350_s0, 4  ;;  %s61_s12 = int_to_ptr.vmem [resolvable:$true] %s60_s12 }
   0xd   :  { %63 = dma.hbm_to_vmem [thread:$0]  %s59_s9, 64, %s61_s12, [#allocation9]  }
   0xe   :  { %337 = dma.done.wait [#allocation3], 128  }
   0xf   :  { %338 = vsyncadd [#allocation3], 4294967168 }
  0x10   :  { %339 = dma.done.wait [#allocation6], 4096  }
  0x11   :  { %340 = vsyncadd [#allocation6], 4294963200 }
  0x12   :  { %341 = dma.done.wait [#allocation9], 64  }
  0x13   :  { %342 = vsyncadd [#allocation9], 4294967232  ;;  %v96_v0 = vld [vmem:[#allocation5 + $0x78] sm:$0xff]  ;;  %v95_v1 = vld [vmem:[#allocation5 + $0x70] sm:$0xff]  ;;  %s195_s16 = sshll.u32 %s405_s5, 4  ;;  %s196_s16 = int_to_ptr.hbm [resolvable:$true] %s195_s16 }
  0x14   :  { %101 = vmatpush.msra.mxu0 %v96_v0  ;;  %v94_v2 = vld [vmem:[#allocation5 + $0x68] sm:$0xff]  ;;  %v93_v3 = vld [vmem:[#allocation5 + $0x60] sm:$0xff]  ;;  %v137_v4 = vld [vmem:[#allocation7 + $0x78] sm:$0xff] }
  0x15   :  { %v92_v5 = vld [vmem:[#allocation5 + $0x58] sm:$0xff]  ;;  %140 = vmatpush.msra.mxu1 %v137_v4  ;;  %v136_v6 = vld [vmem:[#allocation7 + $0x70] sm:$0xff]  ;;  %v135_v7 = vld [vmem:[#allocation7 + $0x68] sm:$0xff] }
  0x16   :  { %102 = vmatpush.msra.mxu0 %v95_v1  ;;  %v91_v8 = vld [vmem:[#allocation5 + $0x50] sm:$0xff]  ;;  %v134_v9 = vld [vmem:[#allocation7 + $0x60] sm:$0xff]  ;;  %v90_v10 = vld [vmem:[#allocation5 + $0x48] sm:$0xff] }
  0x17   :  { %141 = vmatpush.msra.mxu1 %v136_v6  ;;  %v133_v11 = vld [vmem:[#allocation7 + $0x58] sm:$0xff]  ;;  %v89_v12 = vld [vmem:[#allocation5 + $0x40] sm:$0xff]  ;;  %v132_v13 = vld [vmem:[#allocation7 + $0x50] sm:$0xff] }
  0x18   :  { %103 = vmatpush.msra.mxu0 %v94_v2  ;;  %v88_v14 = vld [vmem:[#allocation5 + $0x38] sm:$0xff]  ;;  %v131_v15 = vld [vmem:[#allocation7 + $0x48] sm:$0xff]  ;;  %v87_v16 = vld [vmem:[#allocation5 + $0x30] sm:$0xff] }
  0x19   :  { %142 = vmatpush.msra.mxu1 %v135_v7  ;;  %v130_v17 = vld [vmem:[#allocation7 + $0x40] sm:$0xff]  ;;  %v86_v18 = vld [vmem:[#allocation5 + $0x28] sm:$0xff]  ;;  %v129_v19 = vld [vmem:[#allocation7 + $0x38] sm:$0xff] }
  0x1a   :  { %104 = vmatpush.msra.mxu0 %v93_v3  ;;  %v85_v20 = vld [vmem:[#allocation5 + $0x20] sm:$0xff]  ;;  %v128_v21 = vld [vmem:[#allocation7 + $0x30] sm:$0xff]  ;;  %v84_v22 = vld [vmem:[#allocation5 + $0x18] sm:$0xff] }
  0x1b   :  { %143 = vmatpush.msra.mxu1 %v134_v9  ;;  %v127_v23 = vld [vmem:[#allocation7 + $0x28] sm:$0xff]  ;;  %v83_v24 = vld [vmem:[#allocation5 + $0x10] sm:$0xff]  ;;  %v126_v25 = vld [vmem:[#allocation7 + $0x20] sm:$0xff] }
  0x1c   :  { %105 = vmatpush.msra.mxu0 %v92_v5  ;;  %v82_v26 = vld [vmem:[#allocation5 + $0x8] sm:$0xff]  ;;  %v125_v27 = vld [vmem:[#allocation7 + $0x18] sm:$0xff]  ;;  %v81_v28 = vld [vmem:[#allocation5] sm:$0xff] }
  0x1d   :  { %144 = vmatpush.msra.mxu1 %v133_v11  ;;  %v80_v29 = vld [vmem:[#allocation2] sm:$0xff]  ;;  %v124_v30 = vld [vmem:[#allocation7 + $0x10] sm:$0xff]  ;;  %v123_v31 = vld [vmem:[#allocation7 + $0x8] sm:$0xff] }
  0x1e   :  { %106 = vmatpush.msra.mxu0 %v91_v8  ;;  %v122_v32 = vld [vmem:[#allocation7] sm:$0xff]  ;;  %v214_v33 = vld [vmem:[%s403_s3] ss:$0 sm:$0xff]  ;;  %s351_s3 = smov [#allocation10]  }
  0x1f   :  { %145 = vmatpush.msra.mxu1 %v132_v13  ;;  %v138_v37 = vld [vmem:[#allocation8] sm:$0xf]  ;;  %s193_s13 = sshll.u32 %s351_s3, 4  ;;  %s194_s13 = int_to_ptr.vmem [resolvable:$true] %s193_s13 }
  0x20   :  { %107 = vmatpush.msra.mxu0 %v90_v10  ;;  %v139_v38 = vperm.slane %v138_v37, 0  ;;  %v164_v43 = vperm.slane %v138_v37, 3  ;;  %v182_v56 = vperm.slane %v138_v37, 1  ;;  %v184_v59 = vperm.slane %v138_v37, 2 }
  0x21   :  { %146 = vmatpush.msra.mxu1 %v131_v15 }
  0x22   :  { %108 = vmatpush.msra.mxu0 %v89_v12 }
  0x23   :  { %147 = vmatpush.msra.mxu1 %v130_v17 }
  0x24   :  { %109 = vmatpush.msra.mxu0 %v88_v14 }
  0x25   :  { %148 = vmatpush.msra.mxu1 %v129_v19 }
  0x26   :  { %110 = vmatpush.msra.mxu0 %v87_v16 }
  0x27   :  { %149 = vmatpush.msra.mxu1 %v128_v21 }
  0x28   :  { %111 = vmatpush.msra.mxu0 %v86_v18 }
  0x29   :  { %150 = vmatpush.msra.mxu1 %v127_v23 }
  0x2a   :  { %112 = vmatpush.msra.mxu0 %v85_v20 }
  0x2b   :  { %151 = vmatpush.msra.mxu1 %v126_v25 }
  0x2c   :  { %113 = vmatpush.msra.mxu0 %v84_v22 }
  0x2d   :  { %152 = vmatpush.msra.mxu1 %v125_v27 }
  0x2e   :  { %114 = vmatpush.msra.mxu0 %v83_v24 }
  0x2f   :  { %153 = vmatpush.msra.mxu1 %v124_v30 }
  0x30   :  { %115 = vmatpush.msra.mxu0 %v82_v26 }
  0x31   :  { %154 = vmatpush.msra.mxu1 %v123_v31 }
  0x32   :  { %116 = vmatpush.msra.mxu0 %v81_v28 }
  0x33   :  { %117 = vmatmul.f32.vlgmr.msra.gmra.mxu0 %v80_v29  ;;  %155 = vmatpush.msra.mxu1 %v122_v32 }
  0xb0   :  { %v118_v34 = vpop.f32.mrf.mxu0 }
  0xb1   :  { %v119_v35 = vadd.f32 %v214_v33, %v118_v34 }
  0xb3   :  { %v121_v36 = vmax.f32 %v119_v35, 0.0 }
  0xb5   :  { %156 = vmatmul.f32.vlgmr.msra.gmra.mxu1 %v121_v36 }
 0x132   :  { %v157_v39 = vpop.f32.mrf.mxu1 }
 0x133   :  { %v158_v40 = vadd.f32 %v157_v39, %v139_v38 }
 0x135   :  { %160 = vadd.xlane.f32.xlu0 %v158_v40 }
 0x1a8   :  { %v161_v41 = vpop.xlane.xlu0 %160 }
 0x1a9   :  { %v162_v42 = vmul.f32 0.03125, %v161_v41 }
 0x1ab   :  { %v163_v44 = vsub.f32 %v158_v40, %v162_v42 }
 0x1ad   :  { %v165_v45 = vmul.f32 %v164_v43, %v163_v44 }
 0x1af   :  { %v166_v46 = vmul.f32 %v165_v45, %v165_v45 }
 0x1b1   :  { %167 = vadd.xlane.f32.xlu0 %v166_v46 }
 0x224   :  { %v168_v47 = vpop.xlane.xlu0 %167 }
 0x225   :  { %v169_v48 = vmul.f32 0.03125, %v168_v47 }
 0x227   :  { %v170_v49 = vadd.f32 1e-05, %v169_v48 }
 0x229   :  { %215 = vrsqrt.f32 %v170_v49  ;;  %vm177_vm1 = vweird.f32 %v170_v49 }
 0x22f   :  { %v216_v50 = vpop.eup %215 }
 0x230   :  { %v172_v51 = vmul.f32 %v216_v50, %v170_v49  ;;  %vm178_vm0 = vweird.f32 %v216_v50 }
 0x231   :  { %vm179_vm2 = vmor %vm177_vm1, %vm178_vm0 }
 0x232   :  { %v173_v52 = vmul.f32 %v216_v50, %v172_v51 }
 0x234   :  { %v174_v53 = vmul.f32 0.5, %v173_v52 }
 0x236   :  { %v175_v54 = vsub.f32 1.5, %v174_v53 }
 0x238   :  { %v176_v55 = vmul.f32 %v216_v50, %v175_v54 }
 0x23a   :  { %v180_v57 = vsel %vm179_vm2, %v216_v50, %v176_v55 }
 0x23b   :  { %v181_v58 = vmul.f32 %v180_v57, %v163_v44 }
 0x23d   :  { %v183_v60 = vmul.f32 %v182_v56, %v181_v58 }
 0x23f   :  { %v185_v61 = vadd.f32 %v184_v59, %v183_v60 }
 0x241   :  { %v186_v62 = vadd.f32 %v185_v61, %v80_v29 }
 0x243   :  { %187 = vst [vmem:[#allocation10] sm:$0xff] %v186_v62 }
 0x244   :  { %198 = dma.vmem_to_hbm [thread:$0]  %s194_s13, 128, %s196_s16, [#allocation4]  }
 0x245   :  { %343 = dma.done.wait [#allocation4], 128  }
 0x246   :  { %344 = vsyncadd [#allocation4], 4294967168 }
 0x247   :  { %203 = vsyncpa [#allocation3], 1 }
 0x248   :  { %204 = vsyncpa [#allocation6], 1 }
 0x249   :  { %205 = vsyncpa [#allocation9], 1 }
 0x24a   :  { %206 = vsyncpa [#allocation4], 1 }

</bundles_post_ra>
